<compile_context>
chip_gen: v7x
topology: tpu7x:2x2x1
jax: 0.10.0
libtpu: 0.0.40
codegen_flags: <defaults>
</compile_context>

<pallas_src>
import jax
import jax.numpy as jnp
from jax.experimental import pallas as pl
from jax.experimental.pallas import tpu as pltpu

_LN_EPS = 1e-5  # PyTorch nn.LayerNorm default eps


def metap_spt_kernel(x_ref, w_ref, b_ref, g2_ref, b2_ref, o_ref):
    """Fused LN(patch) -> Linear -> LN(dim) on one feature-major token tile.

    x_ref : [P, tm]   tokens on the 128-lane axis
    w_ref : [D, P]    linear weight with LN1 gamma pre-folded
    b_ref : [D, 1]    linear bias with LN1 beta pre-folded
    g2/b2 : [D, 1]    LN2 affine
    o_ref : [D, tm]
    """
    x = x_ref[...].astype(jnp.float32)
    P = x.shape[0]
    D = o_ref.shape[0]

    # LayerNorm over the patch axis (sublane reductions, lane-local per token).
    inv_p = 1.0 / P
    mu = jnp.sum(x, axis=0, keepdims=True) * inv_p
    ex2 = jnp.sum(x * x, axis=0, keepdims=True) * inv_p
    var = ex2 - mu * mu
    xn = (x - mu) * jax.lax.rsqrt(var + _LN_EPS)          # rsqrt -> EUP slot

    # Linear (LN1 affine already folded into w_ref / b_ref by the wrapper).
    y = jnp.dot(w_ref[...], xn, preferred_element_type=jnp.float32) + b_ref[...]

    # LayerNorm over the embedding axis.
    inv_d = 1.0 / D
    mu2 = jnp.sum(y, axis=0, keepdims=True) * inv_d
    ey2 = jnp.sum(y * y, axis=0, keepdims=True) * inv_d
    var2 = ey2 - mu2 * mu2
    yn = (y - mu2) * jax.lax.rsqrt(var2 + _LN_EPS)
    o_ref[...] = (yn * g2_ref[...] + b2_ref[...]).astype(o_ref.dtype)


def _choose_token_tile(rows, row_tile):
    """Token-axis tile: multiple of 128 (lane-dense) unless it spans all rows.
    When rows > 128, keep >= 2 grid steps so the 'parallel' axis can shard
    across both TensorCores on v7x."""
    if rows <= 128:
        return rows                          # single full-extent tile (legal)
    row_tile = max(128, (row_tile // 128) * 128)
    half = -(-rows // 2)                     # cdiv(rows, 2)
    half = -(-half // 128) * 128             # round up to a lane multiple
    return min(row_tile, half)


def metap_spt(x_img, params, *, patch_h, patch_w, row_tile=1024):
    """x_img: [B, H, W].  Returns tokens [B, H//patch_h, W//patch_w, dim].

    params = (ln1_gamma [P], ln1_beta [P],
              linear_w [dim, P]  (PyTorch [out, in] layout),
              linear_b [dim],
              ln2_gamma [dim], ln2_beta [dim])
    """
    gamma1, beta1, w, lin_b, gamma2, beta2 = params
    B, H, W = x_img.shape
    assert H % patch_h == 0 and W % patch_w == 0
    h, w_out = H // patch_h, W // patch_w
    P = patch_h * patch_w
    D = w.shape[0]
    rows = B * h * w_out

    # Rearrange 'b (h p1) (w p2) -> (p1 p2) (b h w)'  (feature-major slab,
    # one XLA transpose — same cost as the previous row-major rearrange).
    xp = x_img.reshape(B, h, patch_h, w_out, patch_w)
    xp = xp.transpose(2, 4, 0, 1, 3).reshape(P, rows)

    # Fold the LN1 affine into the linear layer; lay params out feature-major.
    w_eff = (w * gamma1[None, :]).astype(jnp.float32)      # [D, P]
    b_eff = (w @ beta1 + lin_b).reshape(D, 1)               # [D, 1]
    g2 = gamma2.reshape(D, 1)
    b2 = beta2.reshape(D, 1)

    tm = _choose_token_tile(rows, row_tile)
    n_tiles = pl.cdiv(rows, tm)

    const = lambda shape: pl.BlockSpec(shape, lambda i: (0, 0))

    out_fm = pl.pallas_call(
        metap_spt_kernel,
        out_shape=jax.ShapeDtypeStruct((D, rows), x_img.dtype),
        grid=(n_tiles,),
        in_specs=[
            pl.BlockSpec((P, tm), lambda i: (0, i)),   # x: streamed token tiles
            const((D, P)),                             # fused weight (resident)
            const((D, 1)),                             # fused bias
            const((D, 1)), const((D, 1)),              # LN2 gamma / beta
        ],
        out_specs=pl.BlockSpec((D, tm), lambda i: (0, i)),
        compiler_params=pltpu.CompilerParams(
            dimension_semantics=("parallel",),         # shard tiles across TCs
        ),
    )(xp, w_eff, b_eff, g2, b2)

    # [D, (b h w)] -> [B, h, w, D]
    return out_fm.reshape(D, B, h, w_out).transpose(1, 2, 3, 0)


def metap_spt_reference(x_img, params, *, patch_h, patch_w):
    """Pure-JAX reference of MetaP_SPT.forward."""
    gamma1, beta1, w, lin_b, gamma2, beta2 = params
    B, H, W = x_img.shape
    h, w_out = H // patch_h, W // patch_w
    P = patch_h * patch_w
    xp = x_img.reshape(B, h, patch_h, w_out, patch_w).transpose(0, 1, 3, 2, 4)
    xp = xp.reshape(B, h, w_out, P)

    def ln(v, g, b):
        mu = v.mean(-1, keepdims=True)
        var = ((v - mu) ** 2).mean(-1, keepdims=True)
        return (v - mu) / jnp.sqrt(var + _LN_EPS) * g + b

    xn = ln(xp, gamma1, beta1)
    y = xn @ w.T + lin_b
    return ln(y, gamma2, beta2)


if __name__ == "__main__":
    # Small shapes consistent with the module: B=2, 16x16 input, 4x4 patches,
    # dim=32  ->  patch_size=16, tokens grid 4x4, rows = 32.
    B, H, W = 2, 16, 16
    patch_h = patch_w = 4
    dim = 32
    P = patch_h * patch_w

    key = jax.random.PRNGKey(0)
    kx, kg1, kb1, kw, kb, kg2, kb2 = jax.random.split(key, 7)

    x_img = jax.random.normal(kx, (B, H, W), jnp.float32)

    bound = 1.0 / jnp.sqrt(P)
    params = (
        1.0 + 0.1 * jax.random.normal(kg1, (P,), jnp.float32),          # LN1 gamma
        0.1 * jax.random.normal(kb1, (P,), jnp.float32),                # LN1 beta
        jax.random.uniform(kw, (dim, P), jnp.float32, -bound, bound),   # Linear W [out,in]
        jax.random.uniform(kb, (dim,), jnp.float32, -bound, bound),     # Linear b
        1.0 + 0.1 * jax.random.normal(kg2, (dim,), jnp.float32),        # LN2 gamma
        0.1 * jax.random.normal(kb2, (dim,), jnp.float32),              # LN2 beta
    )

    out = metap_spt(x_img, params, patch_h=patch_h, patch_w=patch_w)
    out = jax.block_until_ready(out)

    ref = metap_spt_reference(x_img, params, patch_h=patch_h, patch_w=patch_w)
    assert out.shape == (B, H // patch_h, W // patch_w, dim)
    assert jnp.allclose(out, ref, atol=2e-5, rtol=2e-5), "mismatch vs reference"

    print("KERNEL_OK")
</pallas_src>

<mosaic_0001>
module attributes {stable_mosaic.version = 11 : i64} {
  func.func @metap_spt_kernel(%arg0: i32, %arg1: memref<16x32xf32, #tpu.memory_space<vmem>>, %arg2: memref<32x16xf32, #tpu.memory_space<vmem>>, %arg3: memref<32x1xf32, #tpu.memory_space<vmem>>, %arg4: memref<32x1xf32, #tpu.memory_space<vmem>>, %arg5: memref<32x1xf32, #tpu.memory_space<vmem>>, %arg6: memref<32x32xf32, #tpu.memory_space<vmem>>) attributes {dimension_semantics = [#tpu.dimension_semantics<parallel>], iteration_bounds = array<i64: 1>, scalar_prefetch = 0 : i64, scratch_operands = 0 : i64, tpu.core_type = #tpu.core_type<tc>, window_params = [{transform_indices = @transform_0, window_bounds = array<i64: 16, 32>}, {pipeline_mode = #tpu.pipeline_mode<synchronous>, transform_indices = @transform_1, window_bounds = array<i64: 32, 16>}, {pipeline_mode = #tpu.pipeline_mode<synchronous>, transform_indices = @transform_2, window_bounds = array<i64: 32, 1>}, {pipeline_mode = #tpu.pipeline_mode<synchronous>, transform_indices = @transform_3, window_bounds = array<i64: 32, 1>}, {pipeline_mode = #tpu.pipeline_mode<synchronous>, transform_indices = @transform_4, window_bounds = array<i64: 32, 1>}, {transform_indices = @transform_5, window_bounds = array<i64: 32, 32>}]} {
    %c0 = arith.constant 0 : index
    %c0_0 = arith.constant 0 : index
    %0 = vector.load %arg1[%c0, %c0_0] : memref<16x32xf32, #tpu.memory_space<vmem>>, vector<16x32xf32>
    %cst = arith.constant dense<0.000000e+00> : vector<32xf32>
    %1 = vector.multi_reduction <add>, %0, %cst [0] : vector<16x32xf32> to vector<32xf32>
    %2 = vector.shape_cast %1 : vector<32xf32> to vector<1x32xf32>
    %cst_1 = arith.constant 6.250000e-02 : f32
    %3 = vector.broadcast %cst_1 : f32 to vector<1x32xf32>
    %4 = arith.mulf %2, %3 : vector<1x32xf32>
    %5 = arith.mulf %0, %0 : vector<16x32xf32>
    %cst_2 = arith.constant dense<0.000000e+00> : vector<32xf32>
    %6 = vector.multi_reduction <add>, %5, %cst_2 [0] : vector<16x32xf32> to vector<32xf32>
    %7 = vector.shape_cast %6 : vector<32xf32> to vector<1x32xf32>
    %cst_3 = arith.constant 6.250000e-02 : f32
    %8 = vector.broadcast %cst_3 : f32 to vector<1x32xf32>
    %9 = arith.mulf %7, %8 : vector<1x32xf32>
    %10 = arith.mulf %4, %4 : vector<1x32xf32>
    %11 = arith.subf %9, %10 : vector<1x32xf32>
    %12 = vector.broadcast %4 : vector<1x32xf32> to vector<16x32xf32>
    %13 = arith.subf %0, %12 : vector<16x32xf32>
    %cst_4 = arith.constant 9.99999974E-6 : f32
    %14 = vector.broadcast %cst_4 : f32 to vector<1x32xf32>
    %15 = arith.addf %11, %14 : vector<1x32xf32>
    %16 = math.rsqrt %15 : vector<1x32xf32>
    %17 = vector.broadcast %16 : vector<1x32xf32> to vector<16x32xf32>
    %18 = arith.mulf %13, %17 : vector<16x32xf32>
    %c0_5 = arith.constant 0 : index
    %c0_6 = arith.constant 0 : index
    %19 = vector.load %arg2[%c0_5, %c0_6] : memref<32x16xf32, #tpu.memory_space<vmem>>, vector<32x16xf32>
    %cst_7 = arith.constant dense<0.000000e+00> : vector<32x32xf32>
    %20 = tpu.matmul %19, %18, %cst_7 {dimension_numbers = #tpu.dot_dimension_numbers<[1], [0], [0], [1], [0, 0, 1, 1], [], []>} : vector<32x16xf32>, vector<16x32xf32>, vector<32x32xf32> -> vector<32x32xf32>
    %c0_8 = arith.constant 0 : index
    %c0_9 = arith.constant 0 : index
    %21 = vector.load %arg3[%c0_8, %c0_9] : memref<32x1xf32, #tpu.memory_space<vmem>>, vector<32x1xf32>
    %22 = vector.broadcast %21 : vector<32x1xf32> to vector<32x32xf32>
    %23 = arith.addf %20, %22 : vector<32x32xf32>
    %cst_10 = arith.constant dense<0.000000e+00> : vector<32xf32>
    %24 = vector.multi_reduction <add>, %23, %cst_10 [0] : vector<32x32xf32> to vector<32xf32>
    %25 = vector.shape_cast %24 : vector<32xf32> to vector<1x32xf32>
    %cst_11 = arith.constant 3.125000e-02 : f32
    %26 = vector.broadcast %cst_11 : f32 to vector<1x32xf32>
    %27 = arith.mulf %25, %26 : vector<1x32xf32>
    %28 = arith.mulf %23, %23 : vector<32x32xf32>
    %cst_12 = arith.constant dense<0.000000e+00> : vector<32xf32>
    %29 = vector.multi_reduction <add>, %28, %cst_12 [0] : vector<32x32xf32> to vector<32xf32>
    %30 = vector.shape_cast %29 : vector<32xf32> to vector<1x32xf32>
    %cst_13 = arith.constant 3.125000e-02 : f32
    %31 = vector.broadcast %cst_13 : f32 to vector<1x32xf32>
    %32 = arith.mulf %30, %31 : vector<1x32xf32>
    %33 = arith.mulf %27, %27 : vector<1x32xf32>
    %34 = arith.subf %32, %33 : vector<1x32xf32>
    %35 = vector.broadcast %27 : vector<1x32xf32> to vector<32x32xf32>
    %36 = arith.subf %23, %35 : vector<32x32xf32>
    %cst_14 = arith.constant 9.99999974E-6 : f32
    %37 = vector.broadcast %cst_14 : f32 to vector<1x32xf32>
    %38 = arith.addf %34, %37 : vector<1x32xf32>
    %39 = math.rsqrt %38 : vector<1x32xf32>
    %40 = vector.broadcast %39 : vector<1x32xf32> to vector<32x32xf32>
    %41 = arith.mulf %36, %40 : vector<32x32xf32>
    %c0_15 = arith.constant 0 : index
    %c0_16 = arith.constant 0 : index
    %42 = vector.load %arg4[%c0_15, %c0_16] : memref<32x1xf32, #tpu.memory_space<vmem>>, vector<32x1xf32>
    %43 = vector.broadcast %42 : vector<32x1xf32> to vector<32x32xf32>
    %44 = arith.mulf %41, %43 : vector<32x32xf32>
    %c0_17 = arith.constant 0 : index
    %c0_18 = arith.constant 0 : index
    %45 = vector.load %arg5[%c0_17, %c0_18] : memref<32x1xf32, #tpu.memory_space<vmem>>, vector<32x1xf32>
    %46 = vector.broadcast %45 : vector<32x1xf32> to vector<32x32xf32>
    %47 = arith.addf %44, %46 : vector<32x32xf32>
    %c0_19 = arith.constant 0 : index
    %c0_20 = arith.constant 0 : index
    %48 = vector.load %arg6[%c0_19, %c0_20] : memref<32x32xf32, #tpu.memory_space<vmem>>, vector<32x32xf32>
    tpu.vector_store %arg6[%c0_19, %c0_20], %47 {strides = array<i32>} : memref<32x32xf32, #tpu.memory_space<vmem>>, vector<32x32xf32>,
    return
  }
  func.func @transform_0(%arg0: i32) -> (i32, i32) {
    %c0_i32 = arith.constant 0 : i32
    %c0_i32_0 = arith.constant 0 : i32
    return %c0_i32, %arg0 : i32, i32
  }
  func.func @transform_1(%arg0: i32) -> (i32, i32) {
    %c0_i32 = arith.constant 0 : i32
    %c0_i32_0 = arith.constant 0 : i32
    %c0_i32_1 = arith.constant 0 : i32
    return %c0_i32, %c0_i32_0 : i32, i32
  }
  func.func @transform_2(%arg0: i32) -> (i32, i32) {
    %c0_i32 = arith.constant 0 : i32
    %c0_i32_0 = arith.constant 0 : i32
    %c0_i32_1 = arith.constant 0 : i32
    return %c0_i32, %c0_i32_0 : i32, i32
  }
  func.func @transform_3(%arg0: i32) -> (i32, i32) {
    %c0_i32 = arith.constant 0 : i32
    %c0_i32_0 = arith.constant 0 : i32
    %c0_i32_1 = arith.constant 0 : i32
    return %c0_i32, %c0_i32_0 : i32, i32
  }
  func.func @transform_4(%arg0: i32) -> (i32, i32) {
    %c0_i32 = arith.constant 0 : i32
    %c0_i32_0 = arith.constant 0 : i32
    %c0_i32_1 = arith.constant 0 : i32
    return %c0_i32, %c0_i32_0 : i32, i32
  }
  func.func @transform_5(%arg0: i32) -> (i32, i32) {
    %c0_i32 = arith.constant 0 : i32
    %c0_i32_0 = arith.constant 0 : i32
    return %c0_i32, %arg0 : i32, i32
  }
}

</mosaic_0001>

<bundles_post_ra>
// kernel: tpu_custom_call.1
= control target key start
LH: loop header
LB: loop body
LE: loop exit
PB: predicated region body
PF: predicated region fallthrough
CT: control target
= control target key end

     0   :  { %vm23_vm0 = vcmask 261120   ;;  %vm82_vm1 = vcmask 130048   ;;  %v360_v8 = vmov 0   ;;  %s492_s0 = inlined_call_operand.vmem [shape: f32[16,32], index: 0, kind: input, shape index: {}]   ;;  %s493_s1 = inlined_call_operand.vmem [shape: f32[32,16], index: 1, kind: input, shape index: {}]   ;;  %s494_s2 = inlined_call_operand.vmem [shape: f32[32,1], index: 2, kind: input, shape index: {}]   ;;  %s495_s3 = inlined_call_operand.vmem [shape: f32[32,1], index: 3, kind: input, shape index: {}]   ;;  %s496_s4 = inlined_call_operand.vmem [shape: f32[32,1], index: 4, kind: input, shape index: {}]   ;;  %s497_s5 = inlined_call_operand.hbm [shape: f32[32,32], index: 5, kind: output, shape index: {}]  }
   0x1   :  { %v397_v0 = vld [vmem:[%s492_s0] sm:$0xff]  ;;  %v402_v1 = vld [vmem:[%s492_s0 + $0x8] sm:$0xff]  ;;  %v56_v7 = vld [vmem:[%s493_s1 + $0x10] sm:$0xff]  ;;  %330 = vset.pattern.permute.xlu0 %v360_v8  ;;  %331 = vset.pattern.permute.xlu1 %v360_v8 }
   0x2   :  { %v54_v2 = vld [vmem:[%s493_s1] sm:$0xff]  ;;  %v24_v3 = vsel %vm23_vm0, %v397_v0, 0.0  ;;  %v25_v4 = vsel %vm23_vm0, %v402_v1, 0.0  ;;  %v34_v5 = vmul.f32 %v397_v0, %v397_v0  ;;  %v35_v6 = vmul.f32 %v402_v1, %v402_v1  ;;  %317 = vmatprep.mubr.msk.f32.mxu1 %vm82_vm1, %v56_v7  ;;  %v60_v11 = vld [vmem:[%s494_s2 + $0x10] sm:$0xff]  ;;  %v59_v16 = vld [vmem:[%s494_s2 + $0x8] sm:$0xff] }
   0x3   :  { %314 = vmatprep.mubr.msk.f32.mxu0 %vm82_vm1, %v54_v2  ;;  %v26_v9 = vadd.f32 %v25_v4, %v24_v3  ;;  %v58_v10 = vld [vmem:[%s494_s2] sm:$0xff]  ;;  %74 = vperm.xlu1 %331, %v60_v11   ;;  %v61_v17 = vld [vmem:[%s494_s2 + $0x18] sm:$0xff] }
   0x4   :  { %v36_v12 = vsel %vm23_vm0, %v34_v5, 0.0  ;;  %v37_v13 = vsel %vm23_vm0, %v35_v6, 0.0  ;;  %64 = vperm.xlu0 %330, %v58_v10  }
   0x5   :  { %v27_v14 = vrot.slane %v26_v9, 4  ;;  %v38_v15 = vadd.f32 %v37_v13, %v36_v12 }
   0x7   :  { %v28_v18 = vadd.f32 %v27_v14, %v26_v9  ;;  %v39_v19 = vrot.slane %v38_v15, 4 }
   0x8   :  { %10 = vsyncpa [#allocation3], 0  ;;  %69 = vperm.xlu0 %330, %v59_v16   ;;  %79 = vperm.xlu1 %331, %v61_v17   ;;  %v224_v22 = vld [vmem:[%s495_s3] sm:$0xff]  ;;  %v225_v23 = vld [vmem:[%s495_s3 + $0x8] sm:$0xff] }
   0x9   :  { %v29_v20 = vrot.slane %v28_v18, 2  ;;  %v40_v21 = vadd.f32 %v39_v19, %v38_v15  ;;  %v226_v28 = vld [vmem:[%s495_s3 + $0x10] sm:$0xff]  ;;  %v227_v29 = vld [vmem:[%s495_s3 + $0x18] sm:$0xff]  ;;  %v252_v34 = vld [vmem:[%s496_s4] sm:$0xff] }
   0xa   :  { %v253_v35 = vld [vmem:[%s496_s4 + $0x8] sm:$0xff]  ;;  %v254_v39 = vld [vmem:[%s496_s4 + $0x10] sm:$0xff]  ;;  %v255_v40 = vld [vmem:[%s496_s4 + $0x18] sm:$0xff] }
   0xb   :  { %v30_v24 = vadd.f32 %v29_v20, %v28_v18  ;;  %v41_v25 = vrot.slane %v40_v21, 2  ;;  %v55_v48 = vld [vmem:[%s493_s1 + $0x8] sm:$0xff]  ;;  %v57_v49 = vld [vmem:[%s493_s1 + $0x18] sm:$0xff]  ;;  %s361_s1 = smov [#allocation2]  }
   0xc   :  { %230 = vperm.xlu0 %330, %v224_v22   ;;  %235 = vperm.xlu1 %331, %v225_v23   ;;  %s289_s24 = sshll.u32 %s361_s1, 4  ;;  %s290_s24 = int_to_ptr.vmem [resolvable:$true] %s289_s24 }
   0xd   :  { %v31_v26 = vrot.slane %v30_v24, 1  ;;  %v42_v27 = vadd.f32 %v41_v25, %v40_v21  ;;  %s336_s25 = scalar_lea.vmem %s290_s24, 512  ;;  %p341_p1 = scmp.lt.s32.totalorder %s290_s24, %s290_s24 }
   0xe   :  { %p337_p0 = scmp.ne.s32.totalorder %s290_s24, %s336_s25  ;;  %p342_p2 = scmp.lt.s32.totalorder %s336_s25, %s336_s25 }
   0xf   :  { %v32_v30 = vadd.f32 %v31_v26, %v30_v24  ;;  %v43_v31 = vrot.slane %v42_v27, 1 }
  0x10   :  { %240 = vperm.xlu0 %330, %v226_v28   ;;  %245 = vperm.xlu1 %331, %v227_v29   ;;  %p343_p3 = por %p342_p2, %p341_p1 }
  0x11   :  { %v33_v32 = vmul.f32 0.0625, %v32_v30  ;;  %v44_v33 = vadd.f32 %v43_v31, %v42_v27 }
  0x12   :  { %p344_p4 = pnand %p343_p3, %p337_p0 }
  0x13   :  { %v45_v36 = vmul.f32 0.0625, %v44_v33  ;;  %v46_v37 = vmul.f32 %v33_v32, %v33_v32  ;;  %v48_v42 = vsub.f32 %v397_v0, %v33_v32  ;;  %v49_v43 = vsub.f32 %v402_v1, %v33_v32 }
  0x14   :  { %258 = vperm.xlu0 %330, %v252_v34   ;;  %263 = vperm.xlu1 %331, %v253_v35  }
  0x15   :  { %v47_v38 = vsub.f32 %v45_v36, %v46_v37 }
  0x17   :  { %v50_v41 = vadd.f32 1e-05, %v47_v38 }
  0x18   :  { %268 = vperm.xlu0 %330, %v254_v39   ;;  %273 = vperm.xlu1 %331, %v255_v40  }
  0x19   :  { %332 = vrsqrt.f32 %v50_v41 }
  0x23   :  { %v333_v44 = vpop.eup %332 }
  0x24   :  { %v52_v45 = vmul.f32 %v333_v44, %v48_v42  ;;  %v53_v46 = vmul.f32 %v333_v44, %v49_v43 }
  0x26   :  { %v320_v47 = vpack.c.bf16 %v53_v46, %v52_v45 }
  0x28   :  { %321 = vmatprep.subr.bf16.mxu0 %v320_v47  ;;  %324 = vmatprep.subr.bf16.mxu1 %v320_v47 }
  0x29   :  { %323 = vmatpush3.bf16.msra.mxu0 %v320_v47  ;;  %325 = vmatpush3.bf16.msra.mxu1 %v320_v47 }
  0x2c   :  { %315 = vmatmul.mubr.msk.f32.vlgmr.msra.gmra.mrb[0].mxu0 %vm82_vm1, %v55_v48  ;;  %318 = vmatmul.mubr.msk.f32.vlgmr.msra.gmra.mrb[0].mxu1 %vm82_vm1, %v57_v49 }
  0x82   :  { %v75_v51 = vpop.permute.xlu1 %74 }
  0x83   :  { %v65_v50 = vpop.permute.xlu0 %64 }
  0x87   :  { %v70_v52 = vpop.permute.xlu0 %69  ;;  %v80_v53 = vpop.permute.xlu1 %79 }
  0x8b   :  { %v231_v35 = vpop.permute.xlu0 %230  ;;  %v236_v36 = vpop.permute.xlu1 %235 }
  0x8f   :  { %v241_v39 = vpop.permute.xlu0 %240  ;;  %v246_v40 = vpop.permute.xlu1 %245 }
  0x93   :  { %v259_v41 = vpop.permute.xlu0 %258  ;;  %v264_v42 = vpop.permute.xlu1 %263 }
  0xff   :  { %v316_v54 = vpop.f32.mrb[0].mxu0  ;;  %v319_v55 = vpop.f32.mrb[0].mxu1 }
 0x100   :  { %v167_v56 = vadd.f32 %v316_v54, %v70_v52  ;;  %v161_v57 = vpop.f32.mrb[1].mxu0  ;;  %v171_v58 = vpop.f32.mrb[1].mxu1  ;;  %v177_v59 = vadd.f32 %v319_v55, %v80_v53 }
 0x101   :  { %v162_v60 = vadd.f32 %v161_v57, %v65_v50  ;;  %v172_v61 = vadd.f32 %v171_v58, %v75_v51  ;;  %v269_v52 = vpop.permute.xlu0 %268  ;;  %v274_v53 = vpop.permute.xlu1 %273 }
 0x102   :  { %v181_v62 = vsel %vm23_vm0, %v167_v56, 0.0  ;;  %v195_v63 = vmul.f32 %v167_v56, %v167_v56  ;;  %v197_v5 = vmul.f32 %v177_v59, %v177_v59  ;;  %v185_v10 = vsel %vm23_vm0, %v177_v59, 0.0 }
 0x103   :  { %v180_v0 = vsel %vm23_vm0, %v162_v60, 0.0  ;;  %v194_v1 = vmul.f32 %v162_v60, %v162_v60  ;;  %v196_v2 = vmul.f32 %v172_v61, %v172_v61  ;;  %v183_v7 = vsel %vm23_vm0, %v172_v61, 0.0 }
 0x104   :  { %v199_v3 = vsel %vm23_vm0, %v195_v63, 0.0  ;;  %v182_v4 = vadd.f32 %v181_v62, %v180_v0  ;;  %v203_v14 = vsel %vm23_vm0, %v197_v5, 0.0 }
 0x105   :  { %v198_v6 = vsel %vm23_vm0, %v194_v1, 0.0  ;;  %v201_v11 = vsel %vm23_vm0, %v196_v2, 0.0 }
 0x106   :  { %v200_v8 = vadd.f32 %v199_v3, %v198_v6  ;;  %v184_v9 = vadd.f32 %v183_v7, %v182_v4 }
 0x108   :  { %v186_v12 = vadd.f32 %v185_v10, %v184_v9  ;;  %v202_v13 = vadd.f32 %v201_v11, %v200_v8 }
 0x10a   :  { %v187_v15 = vrot.slane %v186_v12, 4  ;;  %v204_v16 = vadd.f32 %v203_v14, %v202_v13 }
 0x10c   :  { %v188_v17 = vadd.f32 %v187_v15, %v186_v12  ;;  %v205_v18 = vrot.slane %v204_v16, 4 }
 0x10e   :  { %v189_v19 = vrot.slane %v188_v17, 2  ;;  %v206_v20 = vadd.f32 %v205_v18, %v204_v16 }
 0x110   :  { %v190_v21 = vadd.f32 %v189_v19, %v188_v17  ;;  %v207_v22 = vrot.slane %v206_v20, 2 }
 0x112   :  { %v191_v23 = vrot.slane %v190_v21, 1  ;;  %v208_v24 = vadd.f32 %v207_v22, %v206_v20 }
 0x114   :  { %v192_v25 = vadd.f32 %v191_v23, %v190_v21  ;;  %v209_v26 = vrot.slane %v208_v24, 1 }
 0x116   :  { %v193_v27 = vmul.f32 0.03125, %v192_v25  ;;  %v210_v28 = vadd.f32 %v209_v26, %v208_v24 }
 0x118   :  { %v211_v29 = vmul.f32 0.03125, %v210_v28  ;;  %v212_v30 = vmul.f32 %v193_v27, %v193_v27  ;;  %v216_v31 = vsub.f32 %v172_v61, %v193_v27  ;;  %v214_v32 = vsub.f32 %v162_v60, %v193_v27 }
 0x119   :  { %v215_v33 = vsub.f32 %v167_v56, %v193_v27  ;;  %v217_v34 = vsub.f32 %v177_v59, %v193_v27 }
 0x11a   :  { %v213_v37 = vsub.f32 %v211_v29, %v212_v30 }
 0x11c   :  { %v218_v38 = vadd.f32 1e-05, %v213_v37 }
 0x11e   :  { %334 = vrsqrt.f32 %v218_v38 }
 0x128   :  { %v335_v43 = vpop.eup %334 }
 0x129   :  { %v222_v44 = vmul.f32 %v335_v43, %v216_v31  ;;  %v220_v45 = vmul.f32 %v335_v43, %v214_v32  ;;  %v221_v46 = vmul.f32 %v335_v43, %v215_v33  ;;  %v223_v47 = vmul.f32 %v335_v43, %v217_v34 }
 0x12b   :  { %v250_v48 = vmul.f32 %v241_v39, %v222_v44  ;;  %v248_v49 = vmul.f32 %v231_v35, %v220_v45  ;;  %v249_v50 = vmul.f32 %v236_v36, %v221_v46  ;;  %v251_v51 = vmul.f32 %v246_v40, %v223_v47 }
 0x12d   :  { %v278_v54 = vadd.f32 %v269_v52, %v250_v48  ;;  %v276_v55 = vadd.f32 %v259_v41, %v248_v49  ;;  %v277_v56 = vadd.f32 %v264_v42, %v249_v50  ;;  %v279_v57 = vadd.f32 %v274_v53, %v251_v51 }
 0x12f   :  { %282 = vst.msk [vmem:[#allocation2 + $0x10] sm:$0xff] %vm23_vm0, %v278_v54  ;;  %280 = vst.msk [vmem:[#allocation2] sm:$0xff] %vm23_vm0, %v276_v55 }
 0x130   :  { %281 = vst.msk [vmem:[#allocation2 + $0x8] sm:$0xff] %vm23_vm0, %v277_v56  ;;  %283 = vst.msk [vmem:[#allocation2 + $0x18] sm:$0xff] %vm23_vm0, %v279_v57 }
 0x131   :  { %347 = shalt.err (!%p344_p4)
}
 0x132   :  { %s348_s28 = scalar_lea.hbm %s497_s5, 512 }
 0x133   :  { %p349_p5 = scmp.ne.s32.totalorder %s497_s5, %s348_s28  ;;  %p352_p6 = scmp.lt.u32.totalorder %s348_s28, %s497_s5 }
 0x135   :  { %p354_p7 = pnand %p352_p6, %p349_p5 }
 0x137   :  { %357 = shalt.err (!%p354_p7)
}
 0x138   :  { %s362_s8 = smov 128   ;;  %s363_s9 = smov 8  }
 0x139   :  { %295 = dma.vmem_to_hbm [thread:$0]  %s290_s24, 512, %s497_s5, [#allocation3], %s362_s8, %s362_s8, %s363_s9  }
 0x13a   :  { %358 = dma.done.wait [#allocation3], 512  }
 0x13b   :  { %359 = vsyncadd [#allocation3], 4294966784 }
 0x13c   :  { %299 = vsyncpa [#allocation3], 1 }

</bundles_post_ra>
